<compile_context>
chip_gen: v7x
topology: tpu7x:2x2x1
jax: 0.10.0
libtpu: 0.0.40
codegen_flags: <defaults>
</compile_context>

<pallas_src>
import functools

import jax
import jax.numpy as jnp
from jax.experimental import pallas as pl
from jax.experimental.pallas import tpu as pltpu


def _round_up(a: int, b: int) -> int:
    return (a + b - 1) // b * b


def _patch_embed_kernel(x_ref, w_ref, addend_ref, o_ref):
    # x_ref:      (1, tm, P)      bf16 patch rows of one batch element
    # w_ref:      (P, Dp)         bf16 projection weight (in x out), Dp = round_up(D, 128)
    # addend_ref: (tm, Dp)        bf16 (bias + positional embedding) rows
    # o_ref:      (1, tm, Dp)     output tile (f32)
    proj = jnp.dot(x_ref[0], w_ref[...], preferred_element_type=jnp.float32)  # (tm, Dp) f32
    o_ref[0] = (proj + addend_ref[...].astype(jnp.float32)).astype(o_ref.dtype)


def extract_patches(x: jnp.ndarray, patch_size: int) -> jnp.ndarray:
    """(B, C, H, W) -> (B, num_patches, C*ps*ps). Pure layout glue (matches torch unfold)."""
    B, C, H, W = x.shape
    gh, gw = H // patch_size, W // patch_size
    x = x.reshape(B, C, gh, patch_size, gw, patch_size)
    x = x.transpose(0, 2, 4, 1, 3, 5)            # (B, gh, gw, C, ps, ps)
    return x.reshape(B, gh * gw, C * patch_size * patch_size)


def patch_embedding(x, weight, bias, pos_embed, patch_size: int, *, row_tile: int = 512):
    """Forward pass of PatchEmbedding.

    x:         (B, C, H, W) float32
    weight:    (embed_dim, patch_dim)   -- PyTorch nn.Linear weight layout
    bias:      (embed_dim,)
    pos_embed: (1, num_patches, embed_dim)
    returns:   (B, num_patches, embed_dim)
    """
    B, C, H, W = x.shape
    out_dtype = x.dtype

    # bf16 cast BEFORE extraction: if the transpose is materialized it is a
    # half-width copy; the whole chain is an input-fusion candidate.
    patches = extract_patches(x.astype(jnp.bfloat16), patch_size)   # (B, N, P) bf16
    _, N, P = patches.shape
    D = weight.shape[0]
    D_pad = _round_up(D, 128)                    # lane-dense output width

    # --- tiling ------------------------------------------------------------
    # Rows per grid step: multiple of 16 (bf16 sublane packing), no padding of
    # the patches array (Pallas handles a partial last row tile).
    tm = min(_round_up(row_tile, 16), _round_up(N, 16))

    # Shrink tm until the per-step working set fits a conservative VMEM budget
    # (target v7x's 64 MiB physical VMEM with headroom).
    vmem_budget = 48 * 1024 * 1024

    def _vmem_bytes(t):
        return (P * D_pad * 2 * 2         # weight, bf16 (worst case double-buffered)
                + t * P * 2 * 2           # x tile, bf16, double-buffered
                + t * D_pad * 2 * 2       # addend tile, bf16, double-buffered
                + t * D_pad * 4 * 2)      # output tile, f32, double-buffered

    while _vmem_bytes(tm) > vmem_budget and tm > 16:
        tm = max(16, _round_up(tm // 2, 16))

    n_tiles = pl.cdiv(N, tm)

    # --- operand preparation -------------------------------------------------
    w_t = weight.T.astype(jnp.bfloat16)                              # (P, D)
    addend = (pos_embed.reshape(N, D) + bias[None, :]).astype(jnp.bfloat16)
    if D_pad != D:
        w_t = jnp.pad(w_t, ((0, 0), (0, D_pad - D)))
        addend = jnp.pad(addend, ((0, 0), (0, D_pad - D)))
    rows_covered = n_tiles * tm
    if rows_covered != N:
        # Tiny array; keeps every addend block read fully in bounds.
        addend = jnp.pad(addend, ((0, rows_covered - N), (0, 0)))

    # --- grid ordering -------------------------------------------------------
    if n_tiles > 1:
        # Addend block index constant while b sweeps the inner axis -> resident.
        grid = (n_tiles, B)
        m_of = lambda i, j: i
        b_of = lambda i, j: j
    else:
        # Single row tile: addend index never changes anyway; put the batch
        # axis outermost so the 2 TensorCores (v7x) can split the batch work.
        grid = (B, n_tiles)
        m_of = lambda i, j: j
        b_of = lambda i, j: i

    flops = 2 * B * N * P * D_pad
    bytes_accessed = (B * N * P * 2            # patches, bf16
                      + P * D_pad * 2          # weight, bf16
                      + addend.size * 2        # bias + pos_embed, bf16
                      + B * N * D_pad * jnp.dtype(out_dtype).itemsize)
    cost = pl.CostEstimate(flops=flops, transcendentals=0, bytes_accessed=bytes_accessed)

    out = pl.pallas_call(
        _patch_embed_kernel,
        out_shape=jax.ShapeDtypeStruct((B, N, D_pad), out_dtype),
        grid_spec=pltpu.PrefetchScalarGridSpec(
            num_scalar_prefetch=0,
            grid=grid,
            in_specs=[
                pl.BlockSpec((1, tm, P), lambda i, j: (b_of(i, j), m_of(i, j), 0)),   # patch rows
                pl.BlockSpec((P, D_pad), lambda i, j: (0, 0)),                        # weight (resident)
                pl.BlockSpec((tm, D_pad), lambda i, j: (m_of(i, j), 0)),              # bias + pos rows
            ],
            out_specs=pl.BlockSpec((1, tm, D_pad), lambda i, j: (b_of(i, j), m_of(i, j), 0)),
        ),
        compiler_params=pltpu.CompilerParams(
            dimension_semantics=("parallel", "parallel"),
            # Fuse the patch-extraction transpose / bf16 cast into the
            # pallas_call input instead of a separate HBM round trip.
            allow_input_fusion=[True, False, False],
            vmem_limit_bytes=vmem_budget,
        ),
        cost_estimate=cost,
    )(patches, w_t, addend)

    if D_pad != D:
        out = out[:, :, :D]
    return out


if __name__ == "__main__":
    # Small, deterministic configuration consistent with the module:
    #   img_size=16, patch_size=4, in_channels=4, embed_dim=32
    #   -> num_patches = (16/4)^2 = 16, patch_dim = 4*4*4 = 64
    B, C, H = 2, 4, 16
    patch_size = 4
    embed_dim = 32
    num_patches = (H // patch_size) ** 2
    patch_dim = C * patch_size * patch_size

    key = jax.random.PRNGKey(0)
    kx, kw, kb, kp = jax.random.split(key, 4)

    x = jax.random.normal(kx, (B, C, H, H), dtype=jnp.float32)
    # nn.Linear-style deterministic init (uniform in +/- 1/sqrt(fan_in))
    limit = 1.0 / jnp.sqrt(jnp.float32(patch_dim))
    weight = jax.random.uniform(kw, (embed_dim, patch_dim), jnp.float32, -limit, limit)
    bias = jax.random.uniform(kb, (embed_dim,), jnp.float32, -limit, limit)
    # pos_embed: torch.rand -> uniform [0, 1)
    pos_embed = jax.random.uniform(kp, (1, num_patches, embed_dim), jnp.float32, 0.0, 1.0)

    fwd = jax.jit(functools.partial(patch_embedding, patch_size=patch_size))
    out = fwd(x, weight, bias, pos_embed)
    out = jax.block_until_ready(out)

    # Reference check in plain JAX (f32). bf16 MXU inputs / bf16 addend -> loosened tolerance.
    patches_ref = extract_patches(x, patch_size)
    ref = patches_ref @ weight.T + bias + pos_embed
    assert out.shape == (B, num_patches, embed_dim)
    assert jnp.allclose(out, ref, atol=2e-2, rtol=2e-2), "mismatch vs reference"

    print("KERNEL_OK")
</pallas_src>

<mosaic_0001>
module attributes {stable_mosaic.version = 11 : i64} {
  func.func @_patch_embed_kernel(%arg0: i32, %arg1: i32, %arg2: memref<1x16x64xbf16, #tpu.memory_space<vmem>>, %arg3: memref<64x128xbf16, #tpu.memory_space<vmem>>, %arg4: memref<16x128xbf16, #tpu.memory_space<vmem>>, %arg5: memref<1x16x128xf32, #tpu.memory_space<vmem>>) attributes {dimension_semantics = [#tpu.dimension_semantics<parallel>, #tpu.dimension_semantics<parallel>], iteration_bounds = array<i64: 2, 1>, scalar_prefetch = 0 : i64, scratch_operands = 0 : i64, tpu.core_type = #tpu.core_type<tc>, window_params = [{transform_indices = @transform_0, window_bounds = array<i64: 1, 16, 64>}, {pipeline_mode = #tpu.pipeline_mode<synchronous>, transform_indices = @transform_1, window_bounds = array<i64: 64, 128>}, {transform_indices = @transform_2, window_bounds = array<i64: 16, 128>}, {transform_indices = @transform_3, window_bounds = array<i64: 1, 16, 128>}]} {
    %c0 = arith.constant 0 : index
    %c0_0 = arith.constant 0 : index
    %c0_1 = arith.constant 0 : index
    %0 = vector.load %arg2[%c0, %c0_0, %c0_1] : memref<1x16x64xbf16, #tpu.memory_space<vmem>>, vector<1x16x64xbf16>
    %1 = vector.shape_cast %0 : vector<1x16x64xbf16> to vector<16x64xbf16>
    %c0_2 = arith.constant 0 : index
    %c0_3 = arith.constant 0 : index
    %2 = vector.load %arg3[%c0_2, %c0_3] : memref<64x128xbf16, #tpu.memory_space<vmem>>, vector<64x128xbf16>
    %cst = arith.constant dense<0.000000e+00> : vector<16x128xf32>
    %3 = tpu.matmul %1, %2, %cst {dimension_numbers = #tpu.dot_dimension_numbers<[1], [0], [0], [1], [0, 0, 1, 1], [], []>} : vector<16x64xbf16>, vector<64x128xbf16>, vector<16x128xf32> -> vector<16x128xf32>
    %c0_4 = arith.constant 0 : index
    %c0_5 = arith.constant 0 : index
    %4 = vector.load %arg4[%c0_4, %c0_5] : memref<16x128xbf16, #tpu.memory_space<vmem>>, vector<16x128xbf16>
    %5 = arith.extf %4 : vector<16x128xbf16> to vector<16x128xf32>
    %6 = arith.addf %3, %5 : vector<16x128xf32>
    %c0_6 = arith.constant 0 : index
    %c0_7 = arith.constant 0 : index
    %c0_8 = arith.constant 0 : index
    %7 = vector.load %arg5[%c0_6, %c0_7, %c0_8] : memref<1x16x128xf32, #tpu.memory_space<vmem>>, vector<1x16x128xf32>
    %8 = vector.shape_cast %7 : vector<1x16x128xf32> to vector<16x128xf32>
    %9 = vector.shape_cast %6 : vector<16x128xf32> to vector<1x16x128xf32>
    tpu.vector_store %arg5[%c0_6, %c0_7, %c0_8], %9 {strides = array<i32>} : memref<1x16x128xf32, #tpu.memory_space<vmem>>, vector<1x16x128xf32>,
    return
  }
  func.func @transform_0(%arg0: i32, %arg1: i32) -> (i32, i32, i32) {
    %c0_i32 = arith.constant 0 : i32
    %c0_i32_0 = arith.constant 0 : i32
    return %arg0, %arg1, %c0_i32 : i32, i32, i32
  }
  func.func @transform_1(%arg0: i32, %arg1: i32) -> (i32, i32) {
    %c0_i32 = arith.constant 0 : i32
    %c0_i32_0 = arith.constant 0 : i32
    %c0_i32_1 = arith.constant 0 : i32
    return %c0_i32, %c0_i32_0 : i32, i32
  }
  func.func @transform_2(%arg0: i32, %arg1: i32) -> (i32, i32) {
    %c0_i32 = arith.constant 0 : i32
    %c0_i32_0 = arith.constant 0 : i32
    return %arg1, %c0_i32 : i32, i32
  }
  func.func @transform_3(%arg0: i32, %arg1: i32) -> (i32, i32, i32) {
    %c0_i32 = arith.constant 0 : i32
    %c0_i32_0 = arith.constant 0 : i32
    return %arg0, %arg1, %c0_i32 : i32, i32, i32
  }
}

</mosaic_0001>

<bundles_post_ra>
// kernel: patch_embedding.1
= control target key start
LH: loop header
LB: loop body
LE: loop exit
PB: predicated region body
PF: predicated region fallthrough
CT: control target
= control target key end

     0   :  { %8 = vsyncpa [#allocation3], 0  ;;  %s765_s0 = inlined_call_operand.vmem [shape: bf16[2,16,64], index: 0, kind: input, shape index: {}]   ;;  %s766_s1 = inlined_call_operand.vmem [shape: bf16[64,128], index: 1, kind: input, shape index: {}]   ;;  %s767_s2 = inlined_call_operand.vmem [shape: bf16[16,128], index: 2, kind: input, shape index: {}]   ;;  %s768_s3 = inlined_call_operand.hbm [shape: f32[2,16,128], index: 3, kind: output, shape index: {}]  }
   0x1   :  { %10 = vsyncpa [#allocation3 + $0x1], 0  ;;  %s635_s12 = smov 0   ;;  %s637_s13 = smov 0  }
   0x2   :  { %s639_s14 = smov 0   ;;  %s641_s15 = smov 0  }
   0x3   :  { %s643_s16 = smov 0   ;;  %s645_s17 = smov 0  }
   0x4 LB: > { %s423_s18 = sadd.s32 4294967295, %s608_s17   ;;  %s424_s19 = sadd.s32 4294967294, %s608_s17   ;;  %s608_s17 = sphi %s645_s17, %s16_s17   ;;  %s604_s16 = sphi %s643_s16, %s775_s16   ;;  %s600_s15 = sphi %s641_s15, %s774_s15   ;;  %s596_s14 = sphi %s639_s14, %s773_s14   ;;  %s592_s13 = sphi %s637_s13, %s772_s13   ;;  %s588_s12 = sphi %s635_s12, %s771_s12  }
   0x5   : > { %s28_s20 = sadd.s32 1, %s604_s16  ;;  %s112_s21 = sadd.s32 1, %s596_s14 }
   0x6   : > { %p30_p0 = scmp.ge.s32.totalorder %s28_s20, 2  ;;  %p122_p1 = scmp.ne.s32.totalorder %s596_s14, %s592_s13 }
   0x7   : > { %p123_p2 = scmp.eq.s32.totalorder %s423_s18, 1  ;;  %p128_p3 = scmp.ne.s32.totalorder %s592_s13, %s588_s12 }
   0x8   : > { %s777_s20 = smov (%p30_p0, %s28_s20), 0  ;;  %p129_p5 = scmp.eq.s32.totalorder %s424_s19, 1 }
   0x9   : > { %p675_p4 = por %p123_p2, %p122_p1  ;;  %s107_s23 = ssub.s32 %s604_s16, %s777_s20 }
   0xa   : > { %p428_p6 = scmp.ge.s32.totalorder %s608_s17, 1  ;;  %p110_p7 = scmp.eq.s32.totalorder %s107_s23, 0 }
   0xb   : > { %p682_p8 = por %p129_p5, %p128_p3  ;;  %p172_p9 = scmp.lt.s32.totalorder %s608_s17, 3 }
   0xc   : > { %s688_s25 = scalar_select %p110_p7, %s596_s14, %s112_s21  }
   0xd   : > { %p173_p10 = pnand %p428_p6, %p172_p9 }
   0xe   : > { %v525_v0 = vld [vmem:[%s766_s1] sm:$0xff] (!%p173_p10)   ;;  %v610_v1 = vmov (!%p173_p10), 0.0   ;;  %v526_v2 = vld [vmem:[%s766_s1 + $0x8] sm:$0xff] (!%p173_p10)   ;;  %vm611_vm0 = vmmov (!%p173_p10), 0   ;;  %p206_p11 = scmp.lt.s32.totalorder (!%p173_p10), %s600_s15, 1  ;;  %v527_v3 = vld [vmem:[%s766_s1 + $0x10] sm:$0xff] (!%p173_p10)  }
   0xf   : > { %176 = sbr.rel (%p173_p10) target bundleno = 262 (0x106), region = 32  ;;  %454 = vmatprep.subr.bf16.mxu0 (!%p173_p10), %v610_v1  ;;  %462 = vmatprep.mubr.msk.bf16.mxu0 (!%p173_p10), %vm611_vm0, %v610_v1  ;;  %v528_v4 = vld [vmem:[%s766_s1 + $0x18] sm:$0xff] (!%p173_p10)   ;;  %vm266_vm1 = vcmask (!%p173_p10), 523264   ;;  %s202_s18 = sand.u32 (!%p173_p10), 1, %s592_s13   ;;  %v446_v6 = vld [vmem:[%s767_s2] sm:$0xff] (!%p173_p10)  }
  0x10   : > { %455 = vmatpush3.bf16.msra.mxu0 (!%p173_p10), %v525_v0  ;;  %s429_s19 = sshll.u32 (!%p173_p10), %s202_s18, 4  ;;  %v447_v7 = vunpack.c.l.bf16 (!%p173_p10), %v446_v6  ;;  %v448_v8 = vunpack.c.h.bf16 (!%p173_p10), %v446_v6  ;;  %s444_s28 = sshll.u32 (!%p173_p10), %s600_s15, 8 }
  0x11   : > { %456 = vmatprep.subr.bf16.mxu0 (!%p173_p10), %v610_v1  ;;  %s204_s26 = scalar_lea.vmem (!%p173_p10), [#allocation2], %s429_s19  ;;  %s717_s4 = scalar_lea.hbm (!%p173_p10), %s768_s3, %s444_s28 }
  0x12   : > { %s329_s27 = sshll.u32 (!%p173_p10), %s204_s26, 4  ;;  %s719_s5 = scalar_lea.sflag (!%p173_p10), [#allocation3], %s202_s18  ;;  %s712_s27 = int_to_ptr.vmem [resolvable:$true] %s329_s27 }
  0x14   : > { %457 = vmatpush3.bf16.msra.mxu0 (!%p173_p10), %v526_v2 }
  0x15   : > { %458 = vmatprep.subr.bf16.mxu0 (!%p173_p10), %v610_v1 }
  0x16   : > { %s207_s30 = scalar_select %p206_p11, %s600_s15, 1 }
  0x17   : > { %s530_s15 = scalar_lea.vmem %s712_s27, 256 }
  0x18   : > { %s443_s6 = sshll.u32 %s207_s30, 3  ;;  %459 = vmatpush3.bf16.msra.mxu0 %v527_v3  ;;  %p531_p12 = scmp.ne.s32.totalorder %s712_s27, %s530_s15 }
  0x19   : > { %s213_s9 = scalar_lea.vmem %s765_s0, %s443_s6  ;;  %460 = vmatprep.subr.bf16.mxu0 %v610_v1  ;;  %s612_s6 = smov [#allocation2]  }
  0x1a   : > { %v529_v5 = vld [vmem:[%s213_s9] sm:$0xff]   ;;  %p532_p13 = pnand %p531_p12, %p675_p4  ;;  %s534_s7 = sshll.u32 %s612_s6, 4  ;;  %s535_s7 = int_to_ptr.vmem [resolvable:$false] %s534_s7 }
  0x1b   : > { %s536_s8 = scalar_lea.vmem %s535_s7, 512  ;;  %p537_p1 = scmp.lt.s32.totalorder %s712_s27, %s535_s7 }
  0x1c   : > { %461 = vmatpush3.bf16.msra.mxu0 %v528_v4  ;;  %p533_p0 = pneg %p532_p13  ;;  %p538_p2 = scmp.lt.s32.totalorder %s536_s8, %s530_s15 }
  0x1e   : > { %p539_p3 = por %p538_p2, %p537_p1 }
  0x1f   : > { %463 = vmatmul.mubr.msk.bf16.vlgmr.msra.gmra.mrb[0].mxu0 %vm266_vm1, %v529_v5 }
  0x20   : > { %p540_p5 = pnand %p539_p3, %p533_p0 }
  0xf2   : > { %v304_v9 = vpop.f32.mrb[0].mxu0 }
  0xf3   : > { %v305_v10 = vadd.f32 %v447_v7, %v304_v9  ;;  %v464_v11 = vpop.f32.mrb[1].mxu0 }
  0xf4   : > { %v307_v12 = vpop.f32.mrb[2].mxu0 }
  0xf5   : > { %311 = vst [vmem:[%s204_s26] sm:$0xff] %v305_v10  ;;  %v308_v13 = vadd.f32 %v448_v8, %v307_v12  ;;  %v465_v14 = vpop.f32.mrb[3].mxu0 }
  0xf7   : > { %312 = vst [vmem:[%s204_s26 + $0x8] sm:$0xff] %v308_v13 }
  0xf8   : > { %543 = shalt.err (!%p540_p5)
}
  0xf9   : > { %s544_s9 = scalar_lea.hbm %s717_s4, 256  ;;  %s548_s18 = scalar_lea.hbm %s768_s3, 512 }
  0xfa   : > { %p545_p6 = scmp.ne.s32.totalorder %s717_s4, %s544_s9  ;;  %p549_p10 = scmp.lt.u32.totalorder %s717_s4, %s768_s3 }
  0xfb   : > { %p550_p11 = scmp.lt.u32.totalorder %s548_s18, %s544_s9  ;;  %p552_p13 = scmp.lt.u32.totalorder %s544_s9, %s717_s4 }
  0xfc   : > { %p546_p7 = pnand %p545_p6, %p675_p4 }
  0xfd   : > { %p551_p12 = por %p550_p11, %p549_p10 }
  0xfe   : > { %p547_p9 = pneg %p546_p7 }
  0xff   : > { %p553_p0 = por %p552_p13, %p551_p12 }
 0x101   : > { %p554_p1 = pnand %p553_p0, %p547_p9 }
 0x103   : > { %557 = shalt.err (!%p554_p1)
}
 0x104   : > { %s613_s23 = smov 128   ;;  %s614_s26 = smov 8  }
 0x105   : > { %466 = dma.vmem_to_hbm [thread:$0]  (%p675_p4), %s712_s27, 256, %s717_s4, %s719_s5, %s613_s23, %s613_s23, %s614_s26  }
 0x106 PF: > { %p472_p2 = scmp.ge.s32.totalorder %s608_s17, 2  ;;  %s344_s28 = sand.u32 1, %s588_s12  }
 0x107   : > { %s345_s29 = scalar_lea.sflag [#allocation3], %s344_s28 }
 0x108   : > { %p469_p3 = pnand %p472_p2, %p682_p8 }
 0x10a   : > { %583 = dma.done.wait (!%p469_p3), %s345_s29, 256  }
 0x10b   : > { %585 = vsyncadd (!%p469_p3), %s345_s29, 4294967040  ;;  %s16_s17 = sadd.s32 1, %s608_s17   ;;  %s771_s12 = smov %s592_s13 }
 0x10c   : > { %p13_p5 = scmp.ge.s32.totalorder %s16_s17, 4   ;;  %s772_s13 = smov %s596_s14 }
 0x10d   : > { %s773_s14 = smov %s688_s25  ;;  %s774_s15 = smov %s604_s16 }
 0x10e   : > { %s775_s16 = smov %s777_s20  ;;  %15 = sbr.rel (!%p13_p5) target bundleno = 4 (0x4), region = 70 }
 0x115   :  { %350 = vsyncpa [#allocation3], 1 }
 0x116   :  { %352 = vsyncpa [#allocation3 + $0x1], 1 }

</bundles_post_ra>
